<compile_context>
chip_gen: v7x
topology: tpu7x:2x2x1
jax: 0.10.0
libtpu: 0.0.40
codegen_flags: <defaults>
</compile_context>

<pallas_src>
import jax
import jax.numpy as jnp
from jax.experimental import pallas as pl
from jax.experimental.pallas import tpu as pltpu


def lstm_kernel(x_ref, wih_ref, whh_ref, b_ref, hc_ref, xg_ref):
    """Whole-sequence LSTM in a single kernel invocation.

    x_ref   : (T, B, I)   time-major inputs (VMEM resident)
    wih_ref : (I, 4H)     W_ih^T  (PyTorch gate order i, f, g, o)
    whh_ref : (H, 4H)     W_hh^T
    b_ref   : (1, 4H)     b_ih + b_hh (f32)
    hc_ref  : (2, B, H)   output slab: [0]=h_n, [1]=c_n
    xg_ref  : (T, B, 4H)  scratch: hoisted input projection (f32)
    """
    T, B, _I = x_ref.shape
    H4 = whh_ref.shape[1]
    H = H4 // 4

    # ---- Prologue: hoist the time-independent projection out of the loop.
    # One tall (T*B, I) @ (I, 4H) matmul instead of T tiny MXU pushes.
    x_all = x_ref[...].reshape(T * B, x_ref.shape[2])
    xg_ref[...] = (
        jnp.dot(x_all, wih_ref[...], preferred_element_type=jnp.float32)
        + b_ref[...]
    ).reshape(T, B, H4)

    # ---- Recurrence: only h @ W_hh^T remains on the serial path.
    def step(t, carry):
        h, c = carry
        gates = xg_ref[t] + jnp.dot(
            h.astype(whh_ref.dtype), whh_ref[...],
            preferred_element_type=jnp.float32)                    # (B, 4H) f32

        # Two dense full-vreg EUP passes, then static slices of the results
        # (cheaper / denser than four narrow per-gate activations).
        sig = jax.nn.sigmoid(gates)
        tah = jnp.tanh(gates)
        i_g = sig[:, 0 * H:1 * H]
        f_g = sig[:, 1 * H:2 * H]
        g_g = tah[:, 2 * H:3 * H]
        o_g = sig[:, 3 * H:4 * H]

        c_new = f_g * c + i_g * g_g
        h_new = o_g * jnp.tanh(c_new)
        return h_new, c_new

    h0 = jnp.zeros((B, H), jnp.float32)
    c0 = jnp.zeros((B, H), jnp.float32)
    h_fin, c_fin = jax.lax.fori_loop(0, T, step, (h0, c0), unroll=True)

    hc_ref[0] = h_fin.astype(hc_ref.dtype)
    hc_ref[1] = c_fin.astype(hc_ref.dtype)


def encoder_forward(x_btI, w_ih, w_hh, b_ih, b_hh, *, matmul_dtype=jnp.float32):
    """x_btI: (B, T, I) batch_first input.  Returns (h_n, c_n), each (1, B, H).

    matmul_dtype=jnp.bfloat16 casts only the MXU operands (x, W_ih^T, W_hh^T);
    accumulation and all gate/state math stay f32 (recommended on v6e/v7x).
    """
    B, T, I = x_btI.shape
    H4 = w_ih.shape[0]
    H = H4 // 4

    # Glue (pure JAX): time-major input, pre-transposed weights, fused bias.
    x_tbi = jnp.transpose(x_btI, (1, 0, 2)).astype(matmul_dtype)   # (T, B, I)
    wih_t = jnp.transpose(w_ih).astype(matmul_dtype)               # (I, 4H)
    whh_t = jnp.transpose(w_hh).astype(matmul_dtype)               # (H, 4H)
    bias = (b_ih.astype(jnp.float32)
            + b_hh.astype(jnp.float32)).reshape(1, H4)             # (1, 4H)

    hc = pl.pallas_call(
        lstm_kernel,
        out_shape=jax.ShapeDtypeStruct((2, B, H), jnp.float32),
        in_specs=[pl.BlockSpec(memory_space=pltpu.MemorySpace.VMEM)] * 4,
        out_specs=pl.BlockSpec(memory_space=pltpu.MemorySpace.VMEM),
        scratch_shapes=[pltpu.VMEM((T, B, H4), jnp.float32)],
    )(x_tbi, wih_t, whh_t, bias)

    h_n = hc[0][None, :, :]   # (num_layers=1, B, H)
    c_n = hc[1][None, :, :]
    return h_n, c_n


def lstm_reference(x_btI, w_ih, w_hh, b_ih, b_hh):
    """Pure-JAX reference mirroring torch.nn.LSTM (batch_first, 1 layer)."""
    B, T, I = x_btI.shape
    H = w_hh.shape[1]
    h = jnp.zeros((B, H), jnp.float32)
    c = jnp.zeros((B, H), jnp.float32)

    def step(carry, x_t):
        h, c = carry
        gates = x_t @ w_ih.T + h @ w_hh.T + b_ih + b_hh
        i_g = jax.nn.sigmoid(gates[:, 0 * H:1 * H])
        f_g = jax.nn.sigmoid(gates[:, 1 * H:2 * H])
        g_g = jnp.tanh(gates[:, 2 * H:3 * H])
        o_g = jax.nn.sigmoid(gates[:, 3 * H:4 * H])
        c_n = f_g * c + i_g * g_g
        h_n = o_g * jnp.tanh(c_n)
        return (h_n, c_n), None

    (h, c), _ = jax.lax.scan(step, (h, c), jnp.transpose(x_btI, (1, 0, 2)))
    return h[None], c[None]


if __name__ == "__main__":
    # Shapes consistent with the module: hidden_size=64, num_layers=1,
    # look_back(T)=8, encoder_input_size=16.  batch=8 fills f32 sublanes.
    B, T, I, H = 8, 8, 16, 64

    key = jax.random.PRNGKey(0)
    k_x, k1, k2, k3, k4 = jax.random.split(key, 5)

    # Same init distribution as torch: U(-1/sqrt(H), 1/sqrt(H)).
    bound = 1.0 / jnp.sqrt(jnp.float32(H))
    w_ih = jax.random.uniform(k1, (4 * H, I), jnp.float32, -bound, bound)
    w_hh = jax.random.uniform(k2, (4 * H, H), jnp.float32, -bound, bound)
    b_ih = jax.random.uniform(k3, (4 * H,), jnp.float32, -bound, bound)
    b_hh = jax.random.uniform(k4, (4 * H,), jnp.float32, -bound, bound)

    x = jax.random.normal(k_x, (B, T, I), jnp.float32)

    h_n, c_n = encoder_forward(x, w_ih, w_hh, b_ih, b_hh)
    h_n = jax.block_until_ready(h_n)
    c_n = jax.block_until_ready(c_n)

    h_ref, c_ref = lstm_reference(x, w_ih, w_hh, b_ih, b_hh)
    assert h_n.shape == (1, B, H) and c_n.shape == (1, B, H)
    assert jnp.allclose(h_n, h_ref, atol=1e-5, rtol=1e-4)
    assert jnp.allclose(c_n, c_ref, atol=1e-5, rtol=1e-4)

    print("KERNEL_OK")
</pallas_src>

<mosaic_0001>
module attributes {stable_mosaic.version = 11 : i64} {
  func.func @lstm_kernel(%arg0: memref<8x8x16xf32, #tpu.memory_space<vmem>>, %arg1: memref<16x256xf32, #tpu.memory_space<vmem>>, %arg2: memref<64x256xf32, #tpu.memory_space<vmem>>, %arg3: memref<1x256xf32, #tpu.memory_space<vmem>>, %arg4: memref<2x8x64xf32, #tpu.memory_space<vmem>>, %arg5: memref<8x8x256xf32, #tpu.memory_space<vmem>>) attributes {dimension_semantics = [], scalar_prefetch = 0 : i64, scratch_operands = 1 : i64, tpu.core_type = #tpu.core_type<tc>} {
    %c0 = arith.constant 0 : index
    %c0_0 = arith.constant 0 : index
    %c0_1 = arith.constant 0 : index
    %0 = vector.load %arg0[%c0, %c0_0, %c0_1] : memref<8x8x16xf32, #tpu.memory_space<vmem>>, vector<8x8x16xf32>
    %1 = vector.shape_cast %0 : vector<8x8x16xf32> to vector<64x16xf32>
    %c0_2 = arith.constant 0 : index
    %c0_3 = arith.constant 0 : index
    %2 = vector.load %arg1[%c0_2, %c0_3] : memref<16x256xf32, #tpu.memory_space<vmem>>, vector<16x256xf32>
    %cst = arith.constant dense<0.000000e+00> : vector<64x256xf32>
    %3 = tpu.matmul %1, %2, %cst {dimension_numbers = #tpu.dot_dimension_numbers<[1], [0], [0], [1], [0, 0, 1, 1], [], []>} : vector<64x16xf32>, vector<16x256xf32>, vector<64x256xf32> -> vector<64x256xf32>
    %c0_4 = arith.constant 0 : index
    %c0_5 = arith.constant 0 : index
    %4 = vector.load %arg3[%c0_4, %c0_5] : memref<1x256xf32, #tpu.memory_space<vmem>>, vector<1x256xf32>
    %5 = vector.broadcast %4 : vector<1x256xf32> to vector<64x256xf32>
    %6 = arith.addf %3, %5 : vector<64x256xf32>
    %7 = vector.shape_cast %6 : vector<64x256xf32> to vector<8x8x256xf32>
    %c0_6 = arith.constant 0 : index
    %c0_7 = arith.constant 0 : index
    %c0_8 = arith.constant 0 : index
    %8 = vector.load %arg5[%c0_6, %c0_7, %c0_8] : memref<8x8x256xf32, #tpu.memory_space<vmem>>, vector<8x8x256xf32>
    tpu.vector_store %arg5[%c0_6, %c0_7, %c0_8], %7 {strides = array<i32>} : memref<8x8x256xf32, #tpu.memory_space<vmem>>, vector<8x8x256xf32>,
    %cst_9 = arith.constant 0.000000e+00 : f32
    %9 = vector.broadcast %cst_9 : f32 to vector<8x64xf32>
    %cst_10 = arith.constant 0.000000e+00 : f32
    %10 = vector.broadcast %cst_10 : f32 to vector<8x64xf32>
    %c0_i32 = arith.constant 0 : i32
    %11 = arith.index_cast %c0_i32 : i32 to index
    %c0_11 = arith.constant 0 : index
    %c0_12 = arith.constant 0 : index
    %12 = vector.load %arg5[%11, %c0_11, %c0_12] : memref<8x8x256xf32, #tpu.memory_space<vmem>>, vector<1x8x256xf32>
    %13 = vector.shape_cast %12 : vector<1x8x256xf32> to vector<8x256xf32>
    %c0_13 = arith.constant 0 : index
    %c0_14 = arith.constant 0 : index
    %14 = vector.load %arg2[%c0_13, %c0_14] : memref<64x256xf32, #tpu.memory_space<vmem>>, vector<64x256xf32>
    %cst_15 = arith.constant dense<0.000000e+00> : vector<8x256xf32>
    %15 = tpu.matmul %9, %14, %cst_15 {dimension_numbers = #tpu.dot_dimension_numbers<[1], [0], [0], [1], [0, 0, 1, 1], [], []>} : vector<8x64xf32>, vector<64x256xf32>, vector<8x256xf32> -> vector<8x256xf32>
    %16 = arith.addf %13, %15 : vector<8x256xf32>
    %17 = arith.negf %16 : vector<8x256xf32>
    %18 = math.exp %17 : vector<8x256xf32>
    %cst_16 = arith.constant 1.000000e+00 : f32
    %19 = vector.broadcast %cst_16 : f32 to vector<8x256xf32>
    %20 = arith.addf %19, %18 : vector<8x256xf32>
    %21 = arith.divf %19, %20 : vector<8x256xf32>
    %22 = math.tanh %16 : vector<8x256xf32>
    %23 = vector.extract_strided_slice %21 {offsets = [0, 0], sizes = [8, 64], strides = [1, 1]} : vector<8x256xf32> to vector<8x64xf32>
    %24 = vector.extract_strided_slice %21 {offsets = [0, 64], sizes = [8, 64], strides = [1, 1]} : vector<8x256xf32> to vector<8x64xf32>
    %25 = vector.extract_strided_slice %22 {offsets = [0, 128], sizes = [8, 64], strides = [1, 1]} : vector<8x256xf32> to vector<8x64xf32>
    %26 = vector.extract_strided_slice %21 {offsets = [0, 192], sizes = [8, 64], strides = [1, 1]} : vector<8x256xf32> to vector<8x64xf32>
    %27 = arith.mulf %24, %10 : vector<8x64xf32>
    %28 = arith.mulf %23, %25 : vector<8x64xf32>
    %29 = arith.addf %27, %28 : vector<8x64xf32>
    %30 = math.tanh %29 : vector<8x64xf32>
    %31 = arith.mulf %26, %30 : vector<8x64xf32>
    %c1_i32 = arith.constant 1 : i32
    %32 = arith.index_cast %c1_i32 : i32 to index
    %c0_17 = arith.constant 0 : index
    %c0_18 = arith.constant 0 : index
    %33 = vector.load %arg5[%32, %c0_17, %c0_18] : memref<8x8x256xf32, #tpu.memory_space<vmem>>, vector<1x8x256xf32>
    %34 = vector.shape_cast %33 : vector<1x8x256xf32> to vector<8x256xf32>
    %c0_19 = arith.constant 0 : index
    %c0_20 = arith.constant 0 : index
    %35 = vector.load %arg2[%c0_19, %c0_20] : memref<64x256xf32, #tpu.memory_space<vmem>>, vector<64x256xf32>
    %cst_21 = arith.constant dense<0.000000e+00> : vector<8x256xf32>
    %36 = tpu.matmul %31, %35, %cst_21 {dimension_numbers = #tpu.dot_dimension_numbers<[1], [0], [0], [1], [0, 0, 1, 1], [], []>} : vector<8x64xf32>, vector<64x256xf32>, vector<8x256xf32> -> vector<8x256xf32>
    %37 = arith.addf %34, %36 : vector<8x256xf32>
    %38 = arith.negf %37 : vector<8x256xf32>
    %39 = math.exp %38 : vector<8x256xf32>
    %cst_22 = arith.constant 1.000000e+00 : f32
    %40 = vector.broadcast %cst_22 : f32 to vector<8x256xf32>
    %41 = arith.addf %40, %39 : vector<8x256xf32>
    %42 = arith.divf %40, %41 : vector<8x256xf32>
    %43 = math.tanh %37 : vector<8x256xf32>
    %44 = vector.extract_strided_slice %42 {offsets = [0, 0], sizes = [8, 64], strides = [1, 1]} : vector<8x256xf32> to vector<8x64xf32>
    %45 = vector.extract_strided_slice %42 {offsets = [0, 64], sizes = [8, 64], strides = [1, 1]} : vector<8x256xf32> to vector<8x64xf32>
    %46 = vector.extract_strided_slice %43 {offsets = [0, 128], sizes = [8, 64], strides = [1, 1]} : vector<8x256xf32> to vector<8x64xf32>
    %47 = vector.extract_strided_slice %42 {offsets = [0, 192], sizes = [8, 64], strides = [1, 1]} : vector<8x256xf32> to vector<8x64xf32>
    %48 = arith.mulf %45, %29 : vector<8x64xf32>
    %49 = arith.mulf %44, %46 : vector<8x64xf32>
    %50 = arith.addf %48, %49 : vector<8x64xf32>
    %51 = math.tanh %50 : vector<8x64xf32>
    %52 = arith.mulf %47, %51 : vector<8x64xf32>
    %c2_i32 = arith.constant 2 : i32
    %53 = arith.index_cast %c2_i32 : i32 to index
    %c0_23 = arith.constant 0 : index
    %c0_24 = arith.constant 0 : index
    %54 = vector.load %arg5[%53, %c0_23, %c0_24] : memref<8x8x256xf32, #tpu.memory_space<vmem>>, vector<1x8x256xf32>
    %55 = vector.shape_cast %54 : vector<1x8x256xf32> to vector<8x256xf32>
    %c0_25 = arith.constant 0 : index
    %c0_26 = arith.constant 0 : index
    %56 = vector.load %arg2[%c0_25, %c0_26] : memref<64x256xf32, #tpu.memory_space<vmem>>, vector<64x256xf32>
    %cst_27 = arith.constant dense<0.000000e+00> : vector<8x256xf32>
    %57 = tpu.matmul %52, %56, %cst_27 {dimension_numbers = #tpu.dot_dimension_numbers<[1], [0], [0], [1], [0, 0, 1, 1], [], []>} : vector<8x64xf32>, vector<64x256xf32>, vector<8x256xf32> -> vector<8x256xf32>
    %58 = arith.addf %55, %57 : vector<8x256xf32>
    %59 = arith.negf %58 : vector<8x256xf32>
    %60 = math.exp %59 : vector<8x256xf32>
    %cst_28 = arith.constant 1.000000e+00 : f32
    %61 = vector.broadcast %cst_28 : f32 to vector<8x256xf32>
    %62 = arith.addf %61, %60 : vector<8x256xf32>
    %63 = arith.divf %61, %62 : vector<8x256xf32>
    %64 = math.tanh %58 : vector<8x256xf32>
    %65 = vector.extract_strided_slice %63 {offsets = [0, 0], sizes = [8, 64], strides = [1, 1]} : vector<8x256xf32> to vector<8x64xf32>
    %66 = vector.extract_strided_slice %63 {offsets = [0, 64], sizes = [8, 64], strides = [1, 1]} : vector<8x256xf32> to vector<8x64xf32>
    %67 = vector.extract_strided_slice %64 {offsets = [0, 128], sizes = [8, 64], strides = [1, 1]} : vector<8x256xf32> to vector<8x64xf32>
    %68 = vector.extract_strided_slice %63 {offsets = [0, 192], sizes = [8, 64], strides = [1, 1]} : vector<8x256xf32> to vector<8x64xf32>
    %69 = arith.mulf %66, %50 : vector<8x64xf32>
    %70 = arith.mulf %65, %67 : vector<8x64xf32>
    %71 = arith.addf %69, %70 : vector<8x64xf32>
    %72 = math.tanh %71 : vector<8x64xf32>
    %73 = arith.mulf %68, %72 : vector<8x64xf32>
    %c3_i32 = arith.constant 3 : i32
    %74 = arith.index_cast %c3_i32 : i32 to index
    %c0_29 = arith.constant 0 : index
    %c0_30 = arith.constant 0 : index
    %75 = vector.load %arg5[%74, %c0_29, %c0_30] : memref<8x8x256xf32, #tpu.memory_space<vmem>>, vector<1x8x256xf32>
    %76 = vector.shape_cast %75 : vector<1x8x256xf32> to vector<8x256xf32>
    %c0_31 = arith.constant 0 : index
    %c0_32 = arith.constant 0 : index
    %77 = vector.load %arg2[%c0_31, %c0_32] : memref<64x256xf32, #tpu.memory_space<vmem>>, vector<64x256xf32>
    %cst_33 = arith.constant dense<0.000000e+00> : vector<8x256xf32>
    %78 = tpu.matmul %73, %77, %cst_33 {dimension_numbers = #tpu.dot_dimension_numbers<[1], [0], [0], [1], [0, 0, 1, 1], [], []>} : vector<8x64xf32>, vector<64x256xf32>, vector<8x256xf32> -> vector<8x256xf32>
    %79 = arith.addf %76, %78 : vector<8x256xf32>
    %80 = arith.negf %79 : vector<8x256xf32>
    %81 = math.exp %80 : vector<8x256xf32>
    %cst_34 = arith.constant 1.000000e+00 : f32
    %82 = vector.broadcast %cst_34 : f32 to vector<8x256xf32>
    %83 = arith.addf %82, %81 : vector<8x256xf32>
    %84 = arith.divf %82, %83 : vector<8x256xf32>
    %85 = math.tanh %79 : vector<8x256xf32>
    %86 = vector.extract_strided_slice %84 {offsets = [0, 0], sizes = [8, 64], strides = [1, 1]} : vector<8x256xf32> to vector<8x64xf32>
    %87 = vector.extract_strided_slice %84 {offsets = [0, 64], sizes = [8, 64], strides = [1, 1]} : vector<8x256xf32> to vector<8x64xf32>
    %88 = vector.extract_strided_slice %85 {offsets = [0, 128], sizes = [8, 64], strides = [1, 1]} : vector<8x256xf32> to vector<8x64xf32>
    %89 = vector.extract_strided_slice %84 {offsets = [0, 192], sizes = [8, 64], strides = [1, 1]} : vector<8x256xf32> to vector<8x64xf32>
    %90 = arith.mulf %87, %71 : vector<8x64xf32>
    %91 = arith.mulf %86, %88 : vector<8x64xf32>
    %92 = arith.addf %90, %91 : vector<8x64xf32>
    %93 = math.tanh %92 : vector<8x64xf32>
    %94 = arith.mulf %89, %93 : vector<8x64xf32>
    %c4_i32 = arith.constant 4 : i32
    %95 = arith.index_cast %c4_i32 : i32 to index
    %c0_35 = arith.constant 0 : index
    %c0_36 = arith.constant 0 : index
    %96 = vector.load %arg5[%95, %c0_35, %c0_36] : memref<8x8x256xf32, #tpu.memory_space<vmem>>, vector<1x8x256xf32>
    %97 = vector.shape_cast %96 : vector<1x8x256xf32> to vector<8x256xf32>
    %c0_37 = arith.constant 0 : index
    %c0_38 = arith.constant 0 : index
    %98 = vector.load %arg2[%c0_37, %c0_38] : memref<64x256xf32, #tpu.memory_space<vmem>>, vector<64x256xf32>
    %cst_39 = arith.constant dense<0.000000e+00> : vector<8x256xf32>
    %99 = tpu.matmul %94, %98, %cst_39 {dimension_numbers = #tpu.dot_dimension_numbers<[1], [0], [0], [1], [0, 0, 1, 1], [], []>} : vector<8x64xf32>, vector<64x256xf32>, vector<8x256xf32> -> vector<8x256xf32>
    %100 = arith.addf %97, %99 : vector<8x256xf32>
    %101 = arith.negf %100 : vector<8x256xf32>
    %102 = math.exp %101 : vector<8x256xf32>
    %cst_40 = arith.constant 1.000000e+00 : f32
    %103 = vector.broadcast %cst_40 : f32 to vector<8x256xf32>
    %104 = arith.addf %103, %102 : vector<8x256xf32>
    %105 = arith.divf %103, %104 : vector<8x256xf32>
    %106 = math.tanh %100 : vector<8x256xf32>
    %107 = vector.extract_strided_slice %105 {offsets = [0, 0], sizes = [8, 64], strides = [1, 1]} : vector<8x256xf32> to vector<8x64xf32>
    %108 = vector.extract_strided_slice %105 {offsets = [0, 64], sizes = [8, 64], strides = [1, 1]} : vector<8x256xf32> to vector<8x64xf32>
    %109 = vector.extract_strided_slice %106 {offsets = [0, 128], sizes = [8, 64], strides = [1, 1]} : vector<8x256xf32> to vector<8x64xf32>
    %110 = vector.extract_strided_slice %105 {offsets = [0, 192], sizes = [8, 64], strides = [1, 1]} : vector<8x256xf32> to vector<8x64xf32>
    %111 = arith.mulf %108, %92 : vector<8x64xf32>
    %112 = arith.mulf %107, %109 : vector<8x64xf32>
    %113 = arith.addf %111, %112 : vector<8x64xf32>
    %114 = math.tanh %113 : vector<8x64xf32>
    %115 = arith.mulf %110, %114 : vector<8x64xf32>
    %c5_i32 = arith.constant 5 : i32
    %116 = arith.index_cast %c5_i32 : i32 to index
    %c0_41 = arith.constant 0 : index
    %c0_42 = arith.constant 0 : index
    %117 = vector.load %arg5[%116, %c0_41, %c0_42] : memref<8x8x256xf32, #tpu.memory_space<vmem>>, vector<1x8x256xf32>
    %118 = vector.shape_cast %117 : vector<1x8x256xf32> to vector<8x256xf32>
    %c0_43 = arith.constant 0 : index
    %c0_44 = arith.constant 0 : index
    %119 = vector.load %arg2[%c0_43, %c0_44] : memref<64x256xf32, #tpu.memory_space<vmem>>, vector<64x256xf32>
    %cst_45 = arith.constant dense<0.000000e+00> : vector<8x256xf32>
    %120 = tpu.matmul %115, %119, %cst_45 {dimension_numbers = #tpu.dot_dimension_numbers<[1], [0], [0], [1], [0, 0, 1, 1], [], []>} : vector<8x64xf32>, vector<64x256xf32>, vector<8x256xf32> -> vector<8x256xf32>
    %121 = arith.addf %118, %120 : vector<8x256xf32>
    %122 = arith.negf %121 : vector<8x256xf32>
    %123 = math.exp %122 : vector<8x256xf32>
    %cst_46 = arith.constant 1.000000e+00 : f32
    %124 = vector.broadcast %cst_46 : f32 to vector<8x256xf32>
    %125 = arith.addf %124, %123 : vector<8x256xf32>
    %126 = arith.divf %124, %125 : vector<8x256xf32>
    %127 = math.tanh %121 : vector<8x256xf32>
    %128 = vector.extract_strided_slice %126 {offsets = [0, 0], sizes = [8, 64], strides = [1, 1]} : vector<8x256xf32> to vector<8x64xf32>
    %129 = vector.extract_strided_slice %126 {offsets = [0, 64], sizes = [8, 64], strides = [1, 1]} : vector<8x256xf32> to vector<8x64xf32>
    %130 = vector.extract_strided_slice %127 {offsets = [0, 128], sizes = [8, 64], strides = [1, 1]} : vector<8x256xf32> to vector<8x64xf32>
    %131 = vector.extract_strided_slice %126 {offsets = [0, 192], sizes = [8, 64], strides = [1, 1]} : vector<8x256xf32> to vector<8x64xf32>
    %132 = arith.mulf %129, %113 : vector<8x64xf32>
    %133 = arith.mulf %128, %130 : vector<8x64xf32>
    %134 = arith.addf %132, %133 : vector<8x64xf32>
    %135 = math.tanh %134 : vector<8x64xf32>
    %136 = arith.mulf %131, %135 : vector<8x64xf32>
    %c6_i32 = arith.constant 6 : i32
    %137 = arith.index_cast %c6_i32 : i32 to index
    %c0_47 = arith.constant 0 : index
    %c0_48 = arith.constant 0 : index
    %138 = vector.load %arg5[%137, %c0_47, %c0_48] : memref<8x8x256xf32, #tpu.memory_space<vmem>>, vector<1x8x256xf32>
    %139 = vector.shape_cast %138 : vector<1x8x256xf32> to vector<8x256xf32>
    %c0_49 = arith.constant 0 : index
    %c0_50 = arith.constant 0 : index
    %140 = vector.load %arg2[%c0_49, %c0_50] : memref<64x256xf32, #tpu.memory_space<vmem>>, vector<64x256xf32>
    %cst_51 = arith.constant dense<0.000000e+00> : vector<8x256xf32>
    %141 = tpu.matmul %136, %140, %cst_51 {dimension_numbers = #tpu.dot_dimension_numbers<[1], [0], [0], [1], [0, 0, 1, 1], [], []>} : vector<8x64xf32>, vector<64x256xf32>, vector<8x256xf32> -> vector<8x256xf32>
    %142 = arith.addf %139, %141 : vector<8x256xf32>
    %143 = arith.negf %142 : vector<8x256xf32>
    %144 = math.exp %143 : vector<8x256xf32>
    %cst_52 = arith.constant 1.000000e+00 : f32
    %145 = vector.broadcast %cst_52 : f32 to vector<8x256xf32>
    %146 = arith.addf %145, %144 : vector<8x256xf32>
    %147 = arith.divf %145, %146 : vector<8x256xf32>
    %148 = math.tanh %142 : vector<8x256xf32>
    %149 = vector.extract_strided_slice %147 {offsets = [0, 0], sizes = [8, 64], strides = [1, 1]} : vector<8x256xf32> to vector<8x64xf32>
    %150 = vector.extract_strided_slice %147 {offsets = [0, 64], sizes = [8, 64], strides = [1, 1]} : vector<8x256xf32> to vector<8x64xf32>
    %151 = vector.extract_strided_slice %148 {offsets = [0, 128], sizes = [8, 64], strides = [1, 1]} : vector<8x256xf32> to vector<8x64xf32>
    %152 = vector.extract_strided_slice %147 {offsets = [0, 192], sizes = [8, 64], strides = [1, 1]} : vector<8x256xf32> to vector<8x64xf32>
    %153 = arith.mulf %150, %134 : vector<8x64xf32>
    %154 = arith.mulf %149, %151 : vector<8x64xf32>
    %155 = arith.addf %153, %154 : vector<8x64xf32>
    %156 = math.tanh %155 : vector<8x64xf32>
    %157 = arith.mulf %152, %156 : vector<8x64xf32>
    %c7_i32 = arith.constant 7 : i32
    %158 = arith.index_cast %c7_i32 : i32 to index
    %c0_53 = arith.constant 0 : index
    %c0_54 = arith.constant 0 : index
    %159 = vector.load %arg5[%158, %c0_53, %c0_54] : memref<8x8x256xf32, #tpu.memory_space<vmem>>, vector<1x8x256xf32>
    %160 = vector.shape_cast %159 : vector<1x8x256xf32> to vector<8x256xf32>
    %c0_55 = arith.constant 0 : index
    %c0_56 = arith.constant 0 : index
    %161 = vector.load %arg2[%c0_55, %c0_56] : memref<64x256xf32, #tpu.memory_space<vmem>>, vector<64x256xf32>
    %cst_57 = arith.constant dense<0.000000e+00> : vector<8x256xf32>
    %162 = tpu.matmul %157, %161, %cst_57 {dimension_numbers = #tpu.dot_dimension_numbers<[1], [0], [0], [1], [0, 0, 1, 1], [], []>} : vector<8x64xf32>, vector<64x256xf32>, vector<8x256xf32> -> vector<8x256xf32>
    %163 = arith.addf %160, %162 : vector<8x256xf32>
    %164 = arith.negf %163 : vector<8x256xf32>
    %165 = math.exp %164 : vector<8x256xf32>
    %cst_58 = arith.constant 1.000000e+00 : f32
    %166 = vector.broadcast %cst_58 : f32 to vector<8x256xf32>
    %167 = arith.addf %166, %165 : vector<8x256xf32>
    %168 = arith.divf %166, %167 : vector<8x256xf32>
    %169 = math.tanh %163 : vector<8x256xf32>
    %170 = vector.extract_strided_slice %168 {offsets = [0, 0], sizes = [8, 64], strides = [1, 1]} : vector<8x256xf32> to vector<8x64xf32>
    %171 = vector.extract_strided_slice %168 {offsets = [0, 64], sizes = [8, 64], strides = [1, 1]} : vector<8x256xf32> to vector<8x64xf32>
    %172 = vector.extract_strided_slice %169 {offsets = [0, 128], sizes = [8, 64], strides = [1, 1]} : vector<8x256xf32> to vector<8x64xf32>
    %173 = vector.extract_strided_slice %168 {offsets = [0, 192], sizes = [8, 64], strides = [1, 1]} : vector<8x256xf32> to vector<8x64xf32>
    %174 = arith.mulf %171, %155 : vector<8x64xf32>
    %175 = arith.mulf %170, %172 : vector<8x64xf32>
    %176 = arith.addf %174, %175 : vector<8x64xf32>
    %177 = math.tanh %176 : vector<8x64xf32>
    %178 = arith.mulf %173, %177 : vector<8x64xf32>
    %c8_i32 = arith.constant 8 : i32
    %c0_59 = arith.constant 0 : index
    %c0_60 = arith.constant 0 : index
    %c0_61 = arith.constant 0 : index
    %179 = vector.load %arg4[%c0_59, %c0_60, %c0_61] : memref<2x8x64xf32, #tpu.memory_space<vmem>>, vector<1x8x64xf32>
    %180 = vector.shape_cast %179 : vector<1x8x64xf32> to vector<8x64xf32>
    %181 = vector.shape_cast %178 : vector<8x64xf32> to vector<1x8x64xf32>
    tpu.vector_store %arg4[%c0_59, %c0_60, %c0_61], %181 {strides = array<i32>} : memref<2x8x64xf32, #tpu.memory_space<vmem>>, vector<1x8x64xf32>,
    %c1 = arith.constant 1 : index
    %c0_62 = arith.constant 0 : index
    %c0_63 = arith.constant 0 : index
    %182 = vector.load %arg4[%c1, %c0_62, %c0_63] : memref<2x8x64xf32, #tpu.memory_space<vmem>>, vector<1x8x64xf32>
    %183 = vector.shape_cast %182 : vector<1x8x64xf32> to vector<8x64xf32>
    %184 = vector.shape_cast %176 : vector<8x64xf32> to vector<1x8x64xf32>
    tpu.vector_store %arg4[%c1, %c0_62, %c0_63], %184 {strides = array<i32>} : memref<2x8x64xf32, #tpu.memory_space<vmem>>, vector<1x8x64xf32>,
    return
  }
}

</mosaic_0001>

<bundles_post_ra>
// kernel: tpu_custom_call.1
= control target key start
LH: loop header
LB: loop body
LE: loop exit
PB: predicated region body
PF: predicated region fallthrough
CT: control target
= control target key end

     0   :  { %9 = vsyncpa [#allocation4], 0  ;;  %s1778_s0 = inlined_call_operand.hbm [shape: f32[8,8,16], index: 0, kind: input, shape index: {}]   ;;  %s1779_s1 = inlined_call_operand.hbm [shape: f32[16,256], index: 1, kind: input, shape index: {}]   ;;  %s1780_s2 = inlined_call_operand.hbm [shape: f32[64,256], index: 2, kind: input, shape index: {}]   ;;  %s1781_s3 = inlined_call_operand.vmem [shape: f32[1,256], index: 3, kind: input, shape index: {}]   ;;  %s1782_s4 = inlined_call_operand.hbm [shape: f32[2,8,64], index: 4, kind: output, shape index: {}]  }
   0x1   :  { %10 = vsyncpa [#allocation7], 0 }
   0x2   :  { %11 = vsyncpa [#allocation5], 0  ;;  %s1499_s15 = smov [#allocation6]   ;;  %s1405_s19 = scalar_lea.hbm %s1779_s1, 512 }
   0x3   :  { %s29_s16 = sshll.u32 %s1499_s15, 4  ;;  %p1406_p0 = scmp.ne.s32.totalorder %s1779_s1, %s1405_s19  ;;  %s30_s16 = int_to_ptr.vmem [resolvable:$true] %s29_s16 }
   0x4   :  { %p1409_p1 = scmp.lt.u32.totalorder %s1405_s19, %s1779_s1 }
   0x6   :  { %p1411_p2 = pnand %p1409_p1, %p1406_p0 }
   0x8   :  { %1414 = shalt.err (!%p1411_p2)
}
   0x9   :  { %s1415_s24 = scalar_lea.vmem %s30_s16, 512  ;;  %p1420_p4 = scmp.lt.s32.totalorder %s30_s16, %s30_s16 }
   0xa   :  { %p1416_p3 = scmp.ne.s32.totalorder %s30_s16, %s1415_s24  ;;  %p1421_p5 = scmp.lt.s32.totalorder %s1415_s24, %s1415_s24 }
   0xc   :  { %p1422_p6 = por %p1421_p5, %p1420_p4 }
   0xe   :  { %p1423_p7 = pnand %p1422_p6, %p1416_p3 }
  0x10   :  { %1426 = shalt.err (!%p1423_p7)
}
  0x11   :  { %s1500_s25 = smov 256   ;;  %s1501_s26 = smov 16  }
  0x12   :  { %35 = dma.hbm_to_vmem [thread:$0]  %s1779_s1, 512, %s30_s16, [#allocation7], %s1500_s25, %s1500_s25, %s1501_s26  }
  0x13   :  { %s1502_s29 = smov [#allocation3]   ;;  %s1427_s7 = scalar_lea.hbm %s1778_s0, 1024 }
  0x14   :  { %s17_s30 = sshll.u32 %s1502_s29, 4  ;;  %p1428_p8 = scmp.ne.s32.totalorder %s1778_s0, %s1427_s7  ;;  %s18_s30 = int_to_ptr.vmem [resolvable:$true] %s17_s30 }
  0x15   :  { %p1431_p9 = scmp.lt.u32.totalorder %s1427_s7, %s1778_s0 }
  0x17   :  { %p1433_p10 = pnand %p1431_p9, %p1428_p8 }
  0x19   :  { %1436 = shalt.err (!%p1433_p10)
}
  0x1a   :  { %s1437_s12 = scalar_lea.vmem %s18_s30, 1024  ;;  %p1442_p12 = scmp.lt.s32.totalorder %s18_s30, %s18_s30 }
  0x1b   :  { %p1438_p11 = scmp.ne.s32.totalorder %s18_s30, %s1437_s12  ;;  %p1443_p13 = scmp.lt.s32.totalorder %s1437_s12, %s1437_s12 }
  0x1d   :  { %p1444_p0 = por %p1443_p13, %p1442_p12 }
  0x1f   :  { %p1445_p1 = pnand %p1444_p0, %p1438_p11 }
  0x21   :  { %1448 = shalt.err (!%p1445_p1)
}
  0x22   :  { %s1503_s1 = smov 128   ;;  %s1504_s13 = smov 8  }
  0x23   :  { %23 = dma.hbm_to_vmem [thread:$0]  %s1778_s0, 1024, %s18_s30, [#allocation4], %s1503_s1, %s1503_s1, %s1504_s13  }
  0x24   :  { %s1505_s16 = smov [#allocation8]   ;;  %s1449_s20 = scalar_lea.hbm %s1780_s2, 2048 }
  0x25   :  { %s41_s17 = sshll.u32 %s1505_s16, 4  ;;  %p1450_p2 = scmp.ne.s32.totalorder %s1780_s2, %s1449_s20  ;;  %s42_s17 = int_to_ptr.vmem [resolvable:$true] %s41_s17 }
  0x26   :  { %p1453_p3 = scmp.lt.u32.totalorder %s1449_s20, %s1780_s2 }
  0x28   :  { %p1455_p4 = pnand %p1453_p3, %p1450_p2 }
  0x2a   :  { %1458 = shalt.err (!%p1455_p4)
}
  0x2b   :  { %s1459_s27 = scalar_lea.vmem %s42_s17, 2048  ;;  %p1464_p6 = scmp.lt.s32.totalorder %s42_s17, %s42_s17 }
  0x2c   :  { %p1460_p5 = scmp.ne.s32.totalorder %s42_s17, %s1459_s27  ;;  %p1465_p7 = scmp.lt.s32.totalorder %s1459_s27, %s1459_s27 }
  0x2e   :  { %p1466_p8 = por %p1465_p7, %p1464_p6 }
  0x30   :  { %p1467_p9 = pnand %p1466_p8, %p1460_p5 }
  0x32   :  { %1470 = shalt.err (!%p1467_p9)
}
  0x33   :  { %47 = dma.hbm_to_vmem [thread:$0]  %s1780_s2, 2048, %s42_s17, [#allocation7], %s1500_s25, %s1500_s25, %s1501_s26  }
  0x34   :  { %1493 = dma.done.wait [#allocation4], 1024  }
  0x35   :  { %1494 = vsyncadd [#allocation4], 4294966272 }
  0x36   :  { %1495 = dma.done.wait [#allocation7], 2560  }
  0x37   :  { %1496 = vsyncadd [#allocation7], 4294964736  ;;  %v1506_v0 = vmov 0.0   ;;  %v68_v1 = vld [vmem:[#allocation6 + $0x8] sm:$0xff]  ;;  %v70_v2 = vld [vmem:[#allocation6 + $0x18] sm:$0xff]  ;;  %vm83_vm0 = vcmask 130048   ;;  %v73_v43 = vlaneseq }
  0x38   :  { %172 = vmatprep.mubr.f32.mxu1 %v1506_v0  ;;  %632 = vmatprep.mubr.f32.mxu0 %v1506_v0  ;;  %v67_v3 = vld [vmem:[#allocation6] sm:$0xff]  ;;  %v1135_v4 = vpack.c.bf16 %v70_v2, %v68_v1  ;;  %v69_v5 = vld [vmem:[#allocation6 + $0x10] sm:$0xff]  ;;  %v240_v6 = vld [vmem:[#allocation8 + $0x8] sm:$0xff]  ;;  %vm255_vm1 = vcmask 523264   ;;  %s1508_s26 = smov [#allocation9]  }
  0x39   :  { %v1137_v7 = vpack.c.bf16 %v69_v5, %v67_v3  ;;  %v242_v8 = vld [vmem:[#allocation8 + $0x18] sm:$0xff]  ;;  %v239_v9 = vld [vmem:[#allocation8] sm:$0xff]  ;;  %v241_v10 = vld [vmem:[#allocation8 + $0x10] sm:$0xff]  ;;  %v74_v46 = vshrl.u32 %v73_v43, 7  ;;  %s1091_s29 = sshll.u32 %s1508_s26, 4  ;;  %s1092_s29 = int_to_ptr.vmem [resolvable:$true] %s1091_s29 }
  0x3a   :  { %1136 = vmatprep.subr.bf16.mxu1 %v1135_v4  ;;  %v1581_v11 = vpack.c.bf16 %v242_v8, %v240_v6  ;;  %v244_v12 = vld [vmem:[#allocation8 + $0x28] sm:$0xff]  ;;  %v59_v13 = vld [vmem:[#allocation3] sm:$0xff]  ;;  %v1583_v14 = vpack.c.bf16 %v241_v10, %v239_v9  ;;  %v246_v15 = vld [vmem:[#allocation8 + $0x38] sm:$0xff]  ;;  %s1471_s30 = scalar_lea.vmem %s1092_s29, 256  ;;  %p1476_p11 = scmp.lt.s32.totalorder %s1092_s29, %s1092_s29 }
  0x3b   :  { %1138 = vmatpush1.bf16.msra.mxu1 %v1137_v7  ;;  %v1586_v16 = vpack.c.bf16 %v246_v15, %v244_v12  ;;  %v243_v17 = vld [vmem:[#allocation8 + $0x20] sm:$0xff]  ;;  %v245_v18 = vld [vmem:[#allocation8 + $0x30] sm:$0xff]  ;;  %v248_v19 = vld [vmem:[#allocation8 + $0x48] sm:$0xff]  ;;  %v75_v49 = vsub.s32 0, %v74_v46  ;;  %v79_v58 = vsub.s32 1, %v74_v46  ;;  %p1472_p10 = scmp.ne.s32.totalorder %s1092_s29, %s1471_s30  ;;  %p1477_p12 = scmp.lt.s32.totalorder %s1471_s30, %s1471_s30 }
  0x3c   :  { %1140 = vmatprep.subr.bf16.mxu1 %v1581_v11  ;;  %1188 = vmatprep.subr.bf16.mxu0 %v1581_v11  ;;  %v250_v20 = vld [vmem:[#allocation8 + $0x58] sm:$0xff]  ;;  %v60_v21 = vld [vmem:[#allocation3 + $0x8] sm:$0xff]  ;;  %v1594_v22 = vpack.c.bf16 %v245_v18, %v243_v17  ;;  %v247_v24 = vld [vmem:[#allocation8 + $0x40] sm:$0xff] }
  0x3d   :  { %1190 = vmatpush1.bf16.msra.mxu0 %v1583_v14  ;;  %v1597_v23 = vpack.c.bf16 %v250_v20, %v248_v19  ;;  %v249_v25 = vld [vmem:[#allocation8 + $0x50] sm:$0xff]  ;;  %v252_v26 = vld [vmem:[#allocation8 + $0x68] sm:$0xff]  ;;  %v254_v27 = vld [vmem:[#allocation8 + $0x78] sm:$0xff]  ;;  %p1478_p13 = por %p1477_p12, %p1476_p11 }
  0x3e   :  { %1104 = vmatmul.mubr.msk.f32.vlgmr.msra.gmra.mrb[0].mxu1 %vm83_vm0, %v59_v13  ;;  %1192 = vmatprep.subr.bf16.mxu0 %v1586_v16  ;;  %v61_v28 = vld [vmem:[#allocation3 + $0x10] sm:$0xff]  ;;  %v1604_v29 = vpack.c.bf16 %v249_v25, %v247_v24  ;;  %v1607_v30 = vpack.c.bf16 %v254_v27, %v252_v26  ;;  %v251_v31 = vld [vmem:[#allocation8 + $0x60] sm:$0xff]  ;;  %v62_v33 = vld [vmem:[#allocation3 + $0x18] sm:$0xff] }
  0x3f   :  { %1142 = vmatpush1.bf16.msra.mxu1 %v1583_v14  ;;  %178 = vmatprep.mubr.f32.mxu1 %v1506_v0  ;;  %v253_v32 = vld [vmem:[#allocation8 + $0x70] sm:$0xff]  ;;  %v63_v35 = vld [vmem:[#allocation3 + $0x20] sm:$0xff]  ;;  %v64_v36 = vld [vmem:[#allocation3 + $0x28] sm:$0xff]  ;;  %p1479_p0 = pnand %p1478_p13, %p1472_p10 }
  0x40   :  { %1144 = vmatprep.subr.bf16.mxu1 %v1586_v16  ;;  %v1614_v34 = vpack.c.bf16 %v253_v32, %v251_v31  ;;  %v65_v37 = vld [vmem:[#allocation3 + $0x30] sm:$0xff]  ;;  %v66_v38 = vld [vmem:[#allocation3 + $0x38] sm:$0xff]  ;;  %v71_v50 = vld [vmem:[%s1781_s3] sm:$0x3]  ;;  %s1507_s3 = smov 64  }
  0x41   :  { %1194 = vmatpush1.bf16.msra.mxu0 %v1594_v22  ;;  %v1664_v53 = vrot.slane %v71_v50, %v75_v49  ;;  %v1667_v59 = vrot.slane %v71_v50, %v79_v58 }
  0x42   :  { %1105 = vmatmul.mubr.msk.f32.gmra.mrb[2].mxu1 %vm83_vm0, %v60_v21  ;;  %1196 = vmatprep.subr.bf16.mxu0 %v1597_v23 }
  0x43   :  { %184 = vmatprep.mubr.f32.mxu1 %v1506_v0  ;;  %1146 = vmatpush1.bf16.msra.mxu1 %v1594_v22 }
  0x44   :  { %1148 = vmatprep.subr.bf16.mxu1 %v1597_v23 }
  0x45   :  { %1198 = vmatpush1.bf16.msra.mxu0 %v1604_v29 }
  0x46   :  { %1106 = vmatmul.mubr.msk.f32.gmra.mrb[4].mxu1 %vm83_vm0, %v61_v28  ;;  %1200 = vmatprep.subr.bf16.mxu0 %v1607_v30 }
  0x47   :  { %190 = vmatprep.mubr.f32.mxu1 %v1506_v0  ;;  %1150 = vmatpush1.bf16.msra.mxu1 %v1604_v29 }
  0x48   :  { %1152 = vmatprep.subr.bf16.mxu1 %v1607_v30 }
  0x49   :  { %1202 = vmatpush1.bf16.msra.mxu0 %v1614_v34 }
  0x4a   :  { %1107 = vmatmul.mubr.msk.f32.gmra.mrb[6].mxu1 %vm83_vm0, %v62_v33  ;;  %1204 = vmatprep.subr.bf16.mxu0 %v1581_v11 }
  0x4b   :  { %196 = vmatprep.mubr.f32.mxu1 %v1506_v0  ;;  %1154 = vmatpush1.bf16.msra.mxu1 %v1614_v34 }
  0x4c   :  { %1156 = vmatprep.subr.bf16.mxu1 %v1581_v11 }
  0x4e   :  { %1108 = vmatmul.mubr.msk.f32.gmra.mrb[8].mxu1 %vm83_vm0, %v63_v35 }
  0x4f   :  { %202 = vmatprep.mubr.f32.mxu1 %v1506_v0 }
  0x52   :  { %1109 = vmatmul.mubr.msk.f32.gmra.mrb[10].mxu1 %vm83_vm0, %v64_v36 }
  0x53   :  { %208 = vmatprep.mubr.f32.mxu1 %v1506_v0 }
  0x56   :  { %1110 = vmatmul.mubr.msk.f32.gmra.mrb[12].mxu1 %vm83_vm0, %v65_v37 }
  0x57   :  { %214 = vmatprep.mubr.f32.mxu1 %v1506_v0 }
  0x5a   :  { %1111 = vmatmul.mubr.msk.f32.gmra.mrb[14].mxu1 %vm83_vm0, %v66_v38 }
  0x5b   :  { %323 = vmatprep.mubr.f32.mxu1 %v1506_v0 }
  0x5e   :  { %324 = vmatmul.mubr.f32.vlgmr.msra.gmra.mrb[0].mxu1 %v1506_v0 }
  0x5f   :  { %1158 = vmatpush1.bf16.msra.mxu1 %v1583_v14  ;;  %426 = vmatprep.mubr.f32.mxu1 %v1506_v0 }
  0x60   :  { %1160 = vmatprep.subr.bf16.mxu1 %v1586_v16 }
  0x63   :  { %1162 = vmatpush1.bf16.msra.mxu1 %v1594_v22 }
  0x64   :  { %1164 = vmatprep.subr.bf16.mxu1 %v1597_v23 }
  0x67   :  { %1166 = vmatpush1.bf16.msra.mxu1 %v1604_v29 }
  0x68   :  { %1168 = vmatprep.subr.bf16.mxu1 %v1607_v30 }
  0x6b   :  { %1170 = vmatpush1.bf16.msra.mxu1 %v1614_v34 }
  0x6c   :  { %1172 = vmatprep.subr.bf16.mxu1 %v1581_v11 }
 0x11d   :  { %v1641_v39 = vpop.f32.mrb[6].mxu1 }
 0x11e   :  { %v1643_v40 = vpop.f32.mrb[7].mxu1 }
 0x121   :  { %v1645_v41 = vpop.f32.mrb[8].mxu1 }
 0x122   :  { %v1647_v42 = vpop.f32.mrb[9].mxu1 }
 0x125   :  { %v1649_v44 = vpop.f32.mrb[10].mxu1 }
 0x126   :  { %v1651_v45 = vpop.f32.mrb[11].mxu1 }
 0x129   :  { %v1653_v47 = vpop.f32.mrb[12].mxu1 }
 0x12a   :  { %v1655_v48 = vpop.f32.mrb[13].mxu1 }
 0x12d   :  { %v1660_v51 = vpop.f32.mrb[14].mxu1 }
 0x12e   :  { %v1662_v52 = vpop.f32.mrb[15].mxu1 }
 0x131   :  { %v325_v54 = vpop.f32.mrb[0].mxu1 }
 0x132   :  { %v1267_v55 = vadd.f32 %v325_v54, %v1664_v53  ;;  %v327_v56 = vpop.f32.mrb[1].mxu1 }
 0x133   :  { %v1268_v60 = vadd.f32 %v327_v56, %v1667_v59 }
 0x134   :  { %v1112_v57 = vmul.f32 -1.442695, %v1267_v55 }
 0x135   :  { %v1113_v3 = vmul.f32 -1.442695, %v1268_v60 }
 0x136   :  { %1309 = vpow2.f32 %v1112_v57 }
 0x137   :  { %1311 = vtanh.f32 %v1268_v60 }
 0x140   :  { %v1310_v61 = vpop.eup %1309 }
 0x141   :  { %v338_v62 = vadd.f32 1.0, %v1310_v61  ;;  %v1312_v63 = vpop.eup %1311 }
 0x143   :  { %1313 = vrcp.f32 %v338_v62 }
 0x144   :  { %1315 = vpow2.f32 %v1113_v3 }
 0x14d   :  { %v1314_v1 = vpop.eup %1313 }
 0x14e   :  { %v346_v2 = vmul.f32 %v1314_v1, %v1312_v63  ;;  %v1316_v4 = vpop.eup %1315  ;;  %v345_v6 = vmul.f32 0.0, %v1314_v1 }
 0x14f   :  { %v339_v5 = vadd.f32 1.0, %v1316_v4 }
 0x150   :  { %348 = vrot.lane.b32.xlu0 %v346_v2, %s1507_s3 }
 0x151   :  { %1317 = vrcp.f32 %v339_v5 }
 0x15b   :  { %v1318_v9 = vpop.eup %1317 }
 0x1c2   :  { %v349_v7 = vpop.permute.xlu0 %348 }
 0x1c3   :  { %v351_v8 = vadd.f32 %v349_v7, %v345_v6 }
 0x1c5   :  { %1319 = vtanh.f32 %v351_v8 }
 0x1cf   :  { %v1320_v10 = vpop.eup %1319 }
 0x1d0   :  { %v353_v12 = vmul.f32 %v1320_v10, %v1318_v9  ;;  %v193_v10 = vadd.f32 %v1641_v39, %v1664_v53 }
 0x1d2   :  { %358 = vrot.lane.b32.xlu0 %v353_v12, %s1507_s3  ;;  %v195_v12 = vadd.f32 %v1643_v40, %v1667_v59 }
 0x244   :  { %v359_v13 = vpop.permute.xlu0 %358 }
 0x245   :  { %1114 = vmatmul.mubr.msk.f32.vlgmr.msra.gmra.mrb[2].mxu1 %vm255_vm1, %v359_v13 }
 0x246   :  { %1174 = vmatpush1.bf16.msra.mxu1 %v1583_v14  ;;  %529 = vmatprep.mubr.f32.mxu1 %v1506_v0 }
 0x247   :  { %1176 = vmatprep.subr.bf16.mxu1 %v1586_v16 }
 0x24a   :  { %1178 = vmatpush1.bf16.msra.mxu1 %v1594_v22 }
 0x24b   :  { %1180 = vmatprep.subr.bf16.mxu1 %v1597_v23 }
 0x24e   :  { %1182 = vmatpush1.bf16.msra.mxu1 %v1604_v29 }
 0x24f   :  { %1184 = vmatprep.subr.bf16.mxu1 %v1607_v30 }
 0x252   :  { %1186 = vmatpush1.bf16.msra.mxu1 %v1614_v34 }
 0x318   :  { %v428_v15 = vpop.f32.mrb[2].mxu1 }
 0x319   :  { %v1269_v17 = vadd.f32 %v428_v15, %v1664_v53  ;;  %v430_v18 = vpop.f32.mrb[3].mxu1 }
 0x31a   :  { %v1270_v20 = vadd.f32 %v430_v18, %v1667_v59 }
 0x31b   :  { %v1115_v19 = vmul.f32 -1.442695, %v1269_v17 }
 0x31c   :  { %v1116_v28 = vmul.f32 -1.442695, %v1270_v20 }
 0x31d   :  { %1321 = vpow2.f32 %v1115_v19 }
 0x31e   :  { %1323 = vtanh.f32 %v1270_v20 }
 0x327   :  { %v1322_v21 = vpop.eup %1321 }
 0x328   :  { %v441_v24 = vadd.f32 1.0, %v1322_v21  ;;  %v1324_v25 = vpop.eup %1323 }
 0x32a   :  { %1325 = vrcp.f32 %v441_v24 }
 0x32b   :  { %1327 = vpow2.f32 %v1116_v28 }
 0x334   :  { %v1326_v26 = vpop.eup %1325 }
 0x335   :  { %v449_v27 = vmul.f32 %v1326_v26, %v1324_v25  ;;  %v1328_v31 = vpop.eup %1327  ;;  %v448_v33 = vmul.f32 %v1326_v26, %v351_v8 }
 0x336   :  { %v442_v32 = vadd.f32 1.0, %v1328_v31 }
 0x337   :  { %451 = vrot.lane.b32.xlu1 %v449_v27, %s1507_s3 }
 0x338   :  { %1329 = vrcp.f32 %v442_v32 }
 0x342   :  { %v1330_v37 = vpop.eup %1329 }
 0x3a9   :  { %v452_v35 = vpop.permute.xlu1 %451 }
 0x3aa   :  { %v454_v36 = vadd.f32 %v452_v35, %v448_v33 }
 0x3ac   :  { %1331 = vtanh.f32 %v454_v36 }
 0x3b6   :  { %v1332_v38 = vpop.eup %1331 }
 0x3b7   :  { %v456_v43 = vmul.f32 %v1332_v38, %v1330_v37  ;;  %v199_v38 = vadd.f32 %v1645_v41, %v1664_v53 }
 0x3b9   :  { %461 = vrot.lane.b32.xlu1 %v456_v43, %s1507_s3  ;;  %v201_v43 = vadd.f32 %v1647_v42, %v1667_v59 }
 0x42b   :  { %v462_v46 = vpop.permute.xlu1 %461 }
 0x42c   :  { %1117 = vmatmul.mubr.msk.f32.vlgmr.msra.gmra.mrb[4].mxu1 %vm255_vm1, %v462_v46 }
 0x4ff   :  { %v531_v49 = vpop.f32.mrb[4].mxu1 }
 0x500   :  { %v1271_v50 = vadd.f32 %v531_v49, %v1664_v53  ;;  %v533_v54 = vpop.f32.mrb[5].mxu1 }
 0x501   :  { %v1272_v56 = vadd.f32 %v533_v54, %v1667_v59 }
 0x502   :  { %v1118_v55 = vmul.f32 -1.442695, %v1271_v50 }
 0x503   :  { %v1119_v63 = vmul.f32 -1.442695, %v1272_v56 }
 0x504   :  { %1333 = vpow2.f32 %v1118_v55 }
 0x505   :  { %1335 = vtanh.f32 %v1272_v56 }
 0x50e   :  { %v1334_v57 = vpop.eup %1333 }
 0x50f   :  { %v544_v58 = vadd.f32 1.0, %v1334_v57  ;;  %v1336_v60 = vpop.eup %1335 }
 0x511   :  { %1337 = vrcp.f32 %v544_v58 }
 0x512   :  { %1339 = vpow2.f32 %v1119_v63 }
 0x51b   :  { %v1338_v61 = vpop.eup %1337 }
 0x51c   :  { %v552_v62 = vmul.f32 %v1338_v61, %v1336_v60  ;;  %v1340_v1 = vpop.eup %1339  ;;  %v551_v3 = vmul.f32 %v1338_v61, %v454_v36 }
 0x51d   :  { %v545_v2 = vadd.f32 1.0, %v1340_v1 }
 0x51e   :  { %554 = vrot.lane.b32.xlu0 %v552_v62, %s1507_s3 }
 0x51f   :  { %1341 = vrcp.f32 %v545_v2 }
 0x529   :  { %v1342_v6 = vpop.eup %1341 }
 0x590   :  { %v555_v4 = vpop.permute.xlu0 %554 }
 0x591   :  { %v557_v5 = vadd.f32 %v555_v4, %v551_v3 }
 0x593   :  { %1343 = vtanh.f32 %v557_v5 }
 0x59d   :  { %v1344_v7 = vpop.eup %1343 }
 0x59e   :  { %v559_v8 = vmul.f32 %v1344_v7, %v1342_v6  ;;  %v205_v7 = vadd.f32 %v1649_v44, %v1664_v53 }
 0x5a0   :  { %564 = vrot.lane.b32.xlu1 %v559_v8, %s1507_s3  ;;  %v207_v8 = vadd.f32 %v1651_v45, %v1667_v59 }
 0x612   :  { %v565_v9 = vpop.permute.xlu1 %564 }
 0x613   :  { %1120 = vmatmul.mubr.msk.f32.vlgmr.msra.gmra.mrb[0].mxu0 %vm255_vm1, %v565_v9 }
 0x614   :  { %1206 = vmatpush1.bf16.msra.mxu0 %v1583_v14  ;;  %735 = vmatprep.mubr.f32.mxu0 %v1506_v0 }
 0x615   :  { %1208 = vmatprep.subr.bf16.mxu0 %v1586_v16 }
 0x618   :  { %1210 = vmatpush1.bf16.msra.mxu0 %v1594_v22 }
 0x619   :  { %1212 = vmatprep.subr.bf16.mxu0 %v1597_v23 }
 0x61c   :  { %1214 = vmatpush1.bf16.msra.mxu0 %v1604_v29 }
 0x61d   :  { %1216 = vmatprep.subr.bf16.mxu0 %v1607_v30 }
 0x620   :  { %1218 = vmatpush1.bf16.msra.mxu0 %v1614_v34 }
 0x621   :  { %1220 = vmatprep.subr.bf16.mxu0 %v1581_v11 }
 0x6e6   :  { %v634_v13 = vpop.f32.mrb[0].mxu0 }
 0x6e7   :  { %v639_v15 = vadd.f32 %v634_v13, %v193_v10  ;;  %v636_v17 = vpop.f32.mrb[1].mxu0 }
 0x6e8   :  { %v640_v18 = vadd.f32 %v636_v17, %v195_v12 }
 0x6e9   :  { %v1121_v19 = vmul.f32 -1.442695, %v639_v15 }
 0x6ea   :  { %v1122_v27 = vmul.f32 -1.442695, %v640_v18 }
 0x6eb   :  { %1345 = vpow2.f32 %v1121_v19 }
 0x6ec   :  { %1347 = vtanh.f32 %v640_v18 }
 0x6f5   :  { %v1346_v20 = vpop.eup %1345 }
 0x6f6   :  { %v647_v21 = vadd.f32 1.0, %v1346_v20  ;;  %v1348_v24 = vpop.eup %1347 }
 0x6f8   :  { %1349 = vrcp.f32 %v647_v21 }
 0x6f9   :  { %1351 = vpow2.f32 %v1122_v27 }
 0x702   :  { %v1350_v25 = vpop.eup %1349 }
 0x703   :  { %v655_v26 = vmul.f32 %v1350_v25, %v1348_v24  ;;  %v1352_v39 = vpop.eup %1351  ;;  %v654_v40 = vmul.f32 %v1350_v25, %v557_v5 }
 0x704   :  { %v648_v28 = vadd.f32 1.0, %v1352_v39 }
 0x705   :  { %657 = vrot.lane.b32.xlu0 %v655_v26, %s1507_s3 }
 0x706   :  { %1353 = vrcp.f32 %v648_v28 }
 0x710   :  { %v1354_v33 = vpop.eup %1353 }
 0x777   :  { %v658_v31 = vpop.permute.xlu0 %657 }
 0x778   :  { %v660_v32 = vadd.f32 %v658_v31, %v654_v40  ;;  %v211_v31 = vadd.f32 %v1653_v47, %v1664_v53 }
 0x77a   :  { %1355 = vtanh.f32 %v660_v32 }
 0x784   :  { %v1356_v35 = vpop.eup %1355 }
 0x785   :  { %v662_v36 = vmul.f32 %v1356_v35, %v1354_v33 }
 0x787   :  { %667 = vrot.lane.b32.xlu1 %v662_v36, %s1507_s3 }
 0x7f9   :  { %v668_v37 = vpop.permute.xlu1 %667 }
 0x7fa   :  { %1123 = vmatmul.mubr.msk.f32.vlgmr.msra.gmra.mrb[2].mxu0 %vm255_vm1, %v668_v37 }
 0x7fb   :  { %1222 = vmatpush1.bf16.msra.mxu0 %v1583_v14  ;;  %838 = vmatprep.mubr.f32.mxu0 %v1506_v0 }
 0x7fc   :  { %1224 = vmatprep.subr.bf16.mxu0 %v1586_v16 }
 0x7ff   :  { %1226 = vmatpush1.bf16.msra.mxu0 %v1594_v22 }
 0x800   :  { %1228 = vmatprep.subr.bf16.mxu0 %v1597_v23 }
 0x803   :  { %1230 = vmatpush1.bf16.msra.mxu0 %v1604_v29 }
 0x804   :  { %1232 = vmatprep.subr.bf16.mxu0 %v1607_v30 }
 0x807   :  { %1234 = vmatpush1.bf16.msra.mxu0 %v1614_v34 }
 0x808   :  { %1236 = vmatprep.subr.bf16.mxu0 %v1581_v11 }
 0x8cd   :  { %v737_v46 = vpop.f32.mrb[2].mxu0 }
 0x8ce   :  { %v742_v49 = vadd.f32 %v737_v46, %v199_v38  ;;  %v739_v50 = vpop.f32.mrb[3].mxu0 }
 0x8cf   :  { %v743_v54 = vadd.f32 %v739_v50, %v201_v43 }
 0x8d0   :  { %v1124_v55 = vmul.f32 -1.442695, %v742_v49 }
 0x8d1   :  { %v1125_v62 = vmul.f32 -1.442695, %v743_v54 }
 0x8d2   :  { %1357 = vpow2.f32 %v1124_v55  ;;  %v217_v55 = vadd.f32 %v1660_v51, %v1664_v53 }
 0x8d3   :  { %1359 = vtanh.f32 %v743_v54 }
 0x8dc   :  { %v1358_v56 = vpop.eup %1357 }
 0x8dd   :  { %v750_v57 = vadd.f32 1.0, %v1358_v56  ;;  %v1360_v58 = vpop.eup %1359  ;;  %v219_v56 = vadd.f32 %v1662_v52, %v1667_v59 }
 0x8df   :  { %1361 = vrcp.f32 %v750_v57 }
 0x8e0   :  { %1363 = vpow2.f32 %v1125_v62 }
 0x8e9   :  { %v1362_v60 = vpop.eup %1361 }
 0x8ea   :  { %v758_v61 = vmul.f32 %v1362_v60, %v1360_v58  ;;  %v1364_v41 = vpop.eup %1363  ;;  %v757_v42 = vmul.f32 %v1362_v60, %v660_v32 }
 0x8eb   :  { %v751_v63 = vadd.f32 1.0, %v1364_v41 }
 0x8ec   :  { %760 = vrot.lane.b32.xlu0 %v758_v61, %s1507_s3 }
 0x8ed   :  { %1365 = vrcp.f32 %v751_v63 }
 0x8f7   :  { %v1366_v3 = vpop.eup %1365 }
 0x95e   :  { %v761_v1 = vpop.permute.xlu0 %760 }
 0x95f   :  { %v763_v2 = vadd.f32 %v761_v1, %v757_v42 }
 0x961   :  { %1367 = vtanh.f32 %v763_v2 }
 0x96b   :  { %v1368_v4 = vpop.eup %1367 }
 0x96c   :  { %v765_v5 = vmul.f32 %v1368_v4, %v1366_v3 }
 0x96e   :  { %770 = vrot.lane.b32.xlu1 %v765_v5, %s1507_s3 }
 0x9e0   :  { %v771_v6 = vpop.permute.xlu1 %770 }
 0x9e1   :  { %1126 = vmatmul.mubr.msk.f32.vlgmr.msra.gmra.mrb[4].mxu0 %vm255_vm1, %v771_v6 }
 0x9e2   :  { %1238 = vmatpush1.bf16.msra.mxu0 %v1583_v14  ;;  %941 = vmatprep.mubr.f32.mxu0 %v1506_v0 }
 0x9e3   :  { %1240 = vmatprep.subr.bf16.mxu0 %v1586_v16 }
 0x9e6   :  { %1242 = vmatpush1.bf16.msra.mxu0 %v1594_v22 }
 0x9e7   :  { %1244 = vmatprep.subr.bf16.mxu0 %v1597_v23 }
 0x9ea   :  { %1246 = vmatpush1.bf16.msra.mxu0 %v1604_v29 }
 0x9eb   :  { %1248 = vmatprep.subr.bf16.mxu0 %v1607_v30 }
 0x9ee   :  { %1250 = vmatpush1.bf16.msra.mxu0 %v1614_v34 }
 0x9ef   :  { %1252 = vmatprep.subr.bf16.mxu0 %v1581_v11 }
 0xab4   :  { %v840_v9 = vpop.f32.mrb[4].mxu0 }
 0xab5   :  { %v845_v10 = vadd.f32 %v840_v9, %v205_v7  ;;  %v842_v12 = vpop.f32.mrb[5].mxu0 }
 0xab6   :  { %v846_v13 = vadd.f32 %v842_v12, %v207_v8 }
 0xab7   :  { %v1127_v15 = vmul.f32 -1.442695, %v845_v10 }
 0xab8   :  { %v1128_v11 = vmul.f32 -1.442695, %v846_v13 }
 0xab9   :  { %1369 = vpow2.f32 %v1127_v15 }
 0xaba   :  { %1371 = vtanh.f32 %v846_v13 }
 0xac3   :  { %v1370_v17 = vpop.eup %1369 }
 0xac4   :  { %v853_v18 = vadd.f32 1.0, %v1370_v17  ;;  %v1372_v19 = vpop.eup %1371 }
 0xac6   :  { %1373 = vrcp.f32 %v853_v18 }
 0xac7   :  { %1375 = vpow2.f32 %v1128_v11 }
 0xad0   :  { %v1374_v20 = vpop.eup %1373 }
 0xad1   :  { %v861_v21 = vmul.f32 %v1374_v20, %v1372_v19  ;;  %v1376_v44 = vpop.eup %1375  ;;  %v860_v45 = vmul.f32 %v1374_v20, %v763_v2 }
 0xad2   :  { %v854_v24 = vadd.f32 1.0, %v1376_v44 }
 0xad3   :  { %863 = vrot.lane.b32.xlu0 %v861_v21, %s1507_s3 }
 0xad4   :  { %1377 = vrcp.f32 %v854_v24 }
 0xade   :  { %v1378_v27 = vpop.eup %1377 }
 0xb45   :  { %v864_v25 = vpop.permute.xlu0 %863 }
 0xb46   :  { %v866_v26 = vadd.f32 %v864_v25, %v860_v45 }
 0xb48   :  { %1379 = vtanh.f32 %v866_v26 }
 0xb52   :  { %v1380_v39 = vpop.eup %1379 }
 0xb53   :  { %v868_v28 = vmul.f32 %v1380_v39, %v1378_v27 }
 0xb55   :  { %873 = vrot.lane.b32.xlu1 %v868_v28, %s1507_s3 }
 0xbc7   :  { %v874_v40 = vpop.permute.xlu1 %873 }
 0xbc8   :  { %1129 = vmatmul.mubr.msk.f32.vlgmr.msra.gmra.mrb[6].mxu0 %vm255_vm1, %v874_v40 }
 0xbc9   :  { %1254 = vmatpush1.bf16.msra.mxu0 %v1583_v14  ;;  %1044 = vmatprep.mubr.f32.mxu0 %v1506_v0  ;;  %v213_v14 = vadd.f32 %v1655_v48, %v1667_v59 }
 0xbca   :  { %1256 = vmatprep.subr.bf16.mxu0 %v1586_v16 }
 0xbcd   :  { %1258 = vmatpush1.bf16.msra.mxu0 %v1594_v22 }
 0xbce   :  { %1260 = vmatprep.subr.bf16.mxu0 %v1597_v23 }
 0xbd1   :  { %1262 = vmatpush1.bf16.msra.mxu0 %v1604_v29 }
 0xbd2   :  { %1264 = vmatprep.subr.bf16.mxu0 %v1607_v30 }
 0xbd5   :  { %1266 = vmatpush1.bf16.msra.mxu0 %v1614_v34 }
 0xc9b   :  { %v943_v32 = vpop.f32.mrb[6].mxu0 }
 0xc9c   :  { %v948_v0 = vadd.f32 %v943_v32, %v211_v31  ;;  %v945_v33 = vpop.f32.mrb[7].mxu0 }
 0xc9d   :  { %v949_v16 = vadd.f32 %v945_v33, %v213_v14 }
 0xc9e   :  { %v1130_v35 = vmul.f32 -1.442695, %v948_v0 }
 0xc9f   :  { %v1131_v34 = vmul.f32 -1.442695, %v949_v16 }
 0xca0   :  { %1381 = vpow2.f32 %v1130_v35 }
 0xca1   :  { %1383 = vtanh.f32 %v949_v16 }
 0xcaa   :  { %v1382_v22 = vpop.eup %1381 }
 0xcab   :  { %v956_v23 = vadd.f32 1.0, %v1382_v22  ;;  %v1384_v29 = vpop.eup %1383 }
 0xcad   :  { %1385 = vrcp.f32 %v956_v23 }
 0xcae   :  { %1387 = vpow2.f32 %v1131_v34 }
 0xcb7   :  { %v1386_v30 = vpop.eup %1385 }
 0xcb8   :  { %v964_v36 = vmul.f32 %v1386_v30, %v1384_v29  ;;  %v1388_v47 = vpop.eup %1387  ;;  %v963_v48 = vmul.f32 %v1386_v30, %v866_v26 }
 0xcb9   :  { %v957_v37 = vadd.f32 1.0, %v1388_v47 }
 0xcba   :  { %966 = vrot.lane.b32.xlu0 %v964_v36, %s1507_s3 }
 0xcbb   :  { %1389 = vrcp.f32 %v957_v37 }
 0xcc5   :  { %v1390_v46 = vpop.eup %1389 }
 0xd2c   :  { %v967_v38 = vpop.permute.xlu0 %966 }
 0xd2d   :  { %v969_v43 = vadd.f32 %v967_v38, %v963_v48 }
 0xd2f   :  { %1391 = vtanh.f32 %v969_v43 }
 0xd39   :  { %v1392_v49 = vpop.eup %1391 }
 0xd3a   :  { %v971_v50 = vmul.f32 %v1392_v49, %v1390_v46 }
 0xd3c   :  { %976 = vrot.lane.b32.xlu1 %v971_v50, %s1507_s3 }
 0xdae   :  { %v977_v54 = vpop.permute.xlu1 %976 }
 0xdaf   :  { %1132 = vmatmul.mubr.msk.f32.vlgmr.msra.gmra.mrb[8].mxu0 %vm255_vm1, %v977_v54 }
 0xe82   :  { %v1046_v57 = vpop.f32.mrb[8].mxu0 }
 0xe83   :  { %v1051_v58 = vadd.f32 %v1046_v57, %v217_v55  ;;  %v1048_v60 = vpop.f32.mrb[9].mxu0 }
 0xe84   :  { %v1052_v61 = vadd.f32 %v1048_v60, %v219_v56 }
 0xe85   :  { %v1133_v62 = vmul.f32 -1.442695, %v1051_v58 }
 0xe86   :  { %v1134_v3 = vmul.f32 -1.442695, %v1052_v61 }
 0xe87   :  { %1393 = vpow2.f32 %v1133_v62 }
 0xe88   :  { %1395 = vtanh.f32 %v1052_v61 }
 0xe91   :  { %v1394_v41 = vpop.eup %1393 }
 0xe92   :  { %v1059_v63 = vadd.f32 1.0, %v1394_v41  ;;  %v1396_v42 = vpop.eup %1395 }
 0xe94   :  { %1397 = vrcp.f32 %v1059_v63 }
 0xe95   :  { %1399 = vpow2.f32 %v1134_v3 }
 0xe9e   :  { %v1398_v1 = vpop.eup %1397 }
 0xe9f   :  { %v1067_v2 = vmul.f32 %v1398_v1, %v1396_v42  ;;  %v1400_v51 = vpop.eup %1399  ;;  %v1066_v52 = vmul.f32 %v1398_v1, %v969_v43 }
 0xea0   :  { %v1060_v53 = vadd.f32 1.0, %v1400_v51 }
 0xea1   :  { %1069 = vrot.lane.b32.xlu0 %v1067_v2, %s1507_s3 }
 0xea2   :  { %1401 = vrcp.f32 %v1060_v53 }
 0xeac   :  { %v1402_v5 = vpop.eup %1401 }
 0xf13   :  { %v1070_v59 = vpop.permute.xlu0 %1069 }
 0xf14   :  { %v1072_v4 = vadd.f32 %v1070_v59, %v1066_v52 }
 0xf16   :  { %1403 = vtanh.f32 %v1072_v4  ;;  %1081 = vrot.lane.b32.xlu0 %v1072_v4, %s1507_s3 }
 0xf20   :  { %v1404_v6 = vpop.eup %1403 }
 0xf21   :  { %v1074_v7 = vmul.f32 %v1404_v6, %v1402_v5 }
 0xf23   :  { %1076 = vrot.lane.b32.xlu1 %v1074_v7, %s1507_s3 }
 0xf88   :  { %v1082_v8 = vpop.permute.xlu0 %1081 }
 0xf89   :  { %1085 = vst.msk [vmem:[#allocation9 + $0x8] sm:$0xff] %vm255_vm1, %v1082_v8 }
 0xf95   :  { %v1077_v9 = vpop.permute.xlu1 %1076 }
 0xf96   :  { %1079 = vst.msk [vmem:[#allocation9] sm:$0xff] %vm255_vm1, %v1077_v9 }
 0xf97   :  { %1482 = shalt.err (!%p1479_p0)
}
 0xf98   :  { %s1483_s7 = scalar_lea.hbm %s1782_s4, 256 }
 0xf99   :  { %p1484_p1 = scmp.ne.s32.totalorder %s1782_s4, %s1483_s7  ;;  %p1487_p2 = scmp.lt.u32.totalorder %s1483_s7, %s1782_s4 }
 0xf9b   :  { %p1489_p3 = pnand %p1487_p2, %p1484_p1 }
 0xf9d   :  { %1492 = shalt.err (!%p1489_p3)
}
 0xf9e   :  { %1097 = dma.vmem_to_hbm [thread:$0]  %s1092_s29, 256, %s1782_s4, [#allocation5], %s1503_s1, %s1503_s1, %s1504_s13  }
 0xf9f   :  { %1497 = dma.done.wait [#allocation5], 256  }
 0xfa0   :  { %1498 = vsyncadd [#allocation5], 4294967040 }
 0xfa1   :  { %1101 = vsyncpa [#allocation4], 1 }
 0xfa2   :  { %1102 = vsyncpa [#allocation7], 1 }
 0xfa3   :  { %1103 = vsyncpa [#allocation5], 1 }

</bundles_post_ra>
